<compile_context>
chip_gen: v7x
topology: tpu7x:2x2x1
jax: 0.10.0
libtpu: 0.0.40
codegen_flags: <defaults>
</compile_context>

<pallas_src>
import jax
import jax.numpy as jnp
import numpy as np
from jax.experimental import pallas as pl
from jax.experimental.pallas import tpu as pltpu


def _attention_kernel(num_heads):
    H = num_heads

    def kernel(x_ref, wq_ref, wk_ref, wv_ref, wp_ref, b_ref, o_ref):
        x = x_ref[0]                                    # (N, C), native dtype
        N, C = x.shape

        # Broadcast x once along the head axis so every matmul below is a
        # plain batched dot_general (batch dim 0 on both operands).
        xh = jnp.broadcast_to(x, (H, N, C))             # (H, N, C)

        # Head-batched QKV projection (scale already folded into wq).
        q = jnp.einsum('hnc,hcd->hnd', xh, wq_ref[...])     # (H, N, D)
        k = jnp.einsum('hnc,hcd->hnd', xh, wk_ref[...])     # (H, N, D)
        v = jnp.einsum('hnc,hcd->hnd', xh, wv_ref[...])     # (H, N, D)

        # Scores + softmax in f32 (v5e has no bf16 VPU/EUP).
        s = jnp.einsum('hqd,hkd->hqk', q, k,
                       preferred_element_type=jnp.float32)  # (H, N, N)
        s = s - jnp.max(s, axis=-1, keepdims=True)
        p = jnp.exp(s)
        p = p * pl.reciprocal(jnp.sum(p, axis=-1, keepdims=True), approx=True)

        # PV matmul with probabilities cast back to the value dtype.
        o = jnp.einsum('hqk,hkd->hqd', p.astype(v.dtype), v,
                       preferred_element_type=jnp.float32)  # (H, N, D)

        # Per-head projection blocks, then reduce over heads:
        #   proj(concat_h o_h) == sum_h o_h @ Wp_h.
        o = o.astype(wp_ref.dtype)
        out_h = jnp.einsum('hnd,hdc->hnc', o, wp_ref[...],
                           preferred_element_type=jnp.float32)  # (H, N, C)
        out = jnp.sum(out_h, axis=0) + b_ref[...].astype(jnp.float32)  # (N, C)

        o_ref[0] = out.astype(o_ref.dtype)

    return kernel


def attention_pallas(x, w_qkv, w_proj, b_proj, num_heads):
    """x: (B, N, C); w_qkv: (3C, C) torch layout; w_proj: (C, C); b_proj: (C,)."""
    B, N, C = x.shape
    H = num_heads
    assert C % H == 0, "dim must be divisible by num_heads"
    D = C // H
    scale = D ** -0.5

    w_qkv = jnp.asarray(w_qkv)      # (3C, C)  rows = output features
    w_proj = jnp.asarray(w_proj)    # (C, C)
    b_proj = jnp.asarray(b_proj)    # (C,)

    # Decompose qkv output features as (3, H, D) and rearrange to per-head
    # (H, C, D) blocks; fold the softmax scale into the q block.
    w3 = w_qkv.reshape(3, H, D, C)
    wq = jnp.transpose(w3[0], (0, 2, 1)) * scale        # (H, C, D), scaled
    wk = jnp.transpose(w3[1], (0, 2, 1))                # (H, C, D)
    wv = jnp.transpose(w3[2], (0, 2, 1))                # (H, C, D)
    wp = jnp.transpose(w_proj, (1, 0)).reshape(H, D, C)  # (H, D, C)
    bp = b_proj.reshape(1, C)                            # (1, C)

    grid_spec = pltpu.PrefetchScalarGridSpec(
        num_scalar_prefetch=0,
        grid=(B,),
        in_specs=[
            pl.BlockSpec((1, N, C), lambda b: (b, 0, 0)),   # x (per-batch tile)
            pl.BlockSpec((H, C, D), lambda b: (0, 0, 0)),   # wq (scale folded)
            pl.BlockSpec((H, C, D), lambda b: (0, 0, 0)),   # wk
            pl.BlockSpec((H, C, D), lambda b: (0, 0, 0)),   # wv
            pl.BlockSpec((H, D, C), lambda b: (0, 0, 0)),   # wp (per-head blocks)
            pl.BlockSpec((1, C), lambda b: (0, 0)),         # proj bias
        ],
        out_specs=pl.BlockSpec((1, N, C), lambda b: (b, 0, 0)),
    )

    dtype_bytes = x.dtype.itemsize
    flops = 2 * B * N * C * (4 * C + 2 * N)          # qkv + qk^T + pv + proj
    transcendentals = B * H * N * N                   # exp
    bytes_accessed = dtype_bytes * (2 * B * N * C + 4 * C * C + C)

    # Per-grid-step live set (f32 upper bound) + double-buffered blocks,
    # with headroom; clamped to a range safe on v5e/v6e/v7x.
    live = 4 * ((H + 2) * N * C        # x, head-broadcast x, output
                + 3 * H * N * D        # q, k, v
                + 3 * H * N * N        # scores / probabilities
                + H * N * D            # attention output
                + H * N * C)           # per-head projected outputs
    blocks = 2 * dtype_bytes * (2 * N * C + 4 * C * C + C)
    vmem_limit = int(min(max(2 * (live + blocks), 32 * 1024 * 1024),
                         48 * 1024 * 1024))

    return pl.pallas_call(
        _attention_kernel(H),
        out_shape=jax.ShapeDtypeStruct((B, N, C), x.dtype),
        grid_spec=grid_spec,
        compiler_params=pltpu.CompilerParams(
            dimension_semantics=("parallel",),
            vmem_limit_bytes=vmem_limit),
        cost_estimate=pl.CostEstimate(
            flops=flops,
            transcendentals=transcendentals,
            bytes_accessed=bytes_accessed),
    )(x, wq, wk, wv, wp, bp)


def attention_reference(x, w_qkv, w_proj, b_proj, num_heads):
    """Pure-JAX mirror of the PyTorch forward (dropout = identity)."""
    B, N, C = x.shape
    D = C // num_heads
    scale = D ** -0.5
    qkv = x @ w_qkv.T                                   # (B, N, 3C), Linear no bias
    q, k, v = jnp.split(qkv, 3, axis=-1)

    def to_heads(t):
        return t.reshape(B, N, num_heads, D).transpose(0, 2, 1, 3)  # b h n d

    q, k, v = map(to_heads, (q, k, v))
    q = q * scale
    attn = jnp.einsum('bhid,bhjd->bhij', q, k)
    attn = jax.nn.softmax(attn, axis=-1)
    o = jnp.einsum('bhij,bhjd->bhid', attn, v)
    o = o.transpose(0, 2, 1, 3).reshape(B, N, C)
    return o @ w_proj.T + b_proj


if __name__ == "__main__":
    B, N, C, H = 2, 8, 128, 2

    key = jax.random.PRNGKey(0)
    kx, kqkv, kp, kb = jax.random.split(key, 4)

    x = jax.random.normal(kx, (B, N, C), dtype=jnp.float32)
    # Torch-style parameter shapes: qkv.weight (3C, C), proj.weight (C, C), proj.bias (C,)
    w_qkv = jax.random.normal(kqkv, (3 * C, C), dtype=jnp.float32) * 0.05
    w_proj = jax.random.normal(kp, (C, C), dtype=jnp.float32) * 0.05
    b_proj = jax.random.normal(kb, (C,), dtype=jnp.float32) * 0.05

    out = attention_pallas(x, w_qkv, w_proj, b_proj, H)
    out = jax.block_until_ready(out)

    ref = attention_reference(x, w_qkv, w_proj, b_proj, H)
    # Tolerance loosened vs 1e-5 because the softmax denominator uses the EUP
    # approximate reciprocal (pl.reciprocal(approx=True)).
    np.testing.assert_allclose(np.asarray(out), np.asarray(ref), rtol=2e-3, atol=2e-3)

    print("KERNEL_OK")
</pallas_src>

<mosaic_0001>
module attributes {stable_mosaic.version = 11 : i64} {
  func.func @kernel(%arg0: i32, %arg1: memref<1x8x128xf32, #tpu.memory_space<vmem>>, %arg2: memref<2x128x64xf32, #tpu.memory_space<vmem>>, %arg3: memref<2x128x64xf32, #tpu.memory_space<vmem>>, %arg4: memref<2x128x64xf32, #tpu.memory_space<vmem>>, %arg5: memref<2x64x128xf32, #tpu.memory_space<vmem>>, %arg6: memref<1x128xf32, #tpu.memory_space<vmem>>, %arg7: memref<1x8x128xf32, #tpu.memory_space<vmem>>) attributes {dimension_semantics = [#tpu.dimension_semantics<parallel>], iteration_bounds = array<i64: 2>, scalar_prefetch = 0 : i64, scratch_operands = 0 : i64, tpu.core_type = #tpu.core_type<tc>, window_params = [{transform_indices = @transform_0, window_bounds = array<i64: 1, 8, 128>}, {pipeline_mode = #tpu.pipeline_mode<synchronous>, transform_indices = @transform_1, window_bounds = array<i64: 2, 128, 64>}, {pipeline_mode = #tpu.pipeline_mode<synchronous>, transform_indices = @transform_2, window_bounds = array<i64: 2, 128, 64>}, {pipeline_mode = #tpu.pipeline_mode<synchronous>, transform_indices = @transform_3, window_bounds = array<i64: 2, 128, 64>}, {pipeline_mode = #tpu.pipeline_mode<synchronous>, transform_indices = @transform_4, window_bounds = array<i64: 2, 64, 128>}, {pipeline_mode = #tpu.pipeline_mode<synchronous>, transform_indices = @transform_5, window_bounds = array<i64: 1, 128>}, {transform_indices = @transform_6, window_bounds = array<i64: 1, 8, 128>}]} {
    %c0 = arith.constant 0 : index
    %c0_0 = arith.constant 0 : index
    %c0_1 = arith.constant 0 : index
    %0 = vector.load %arg1[%c0, %c0_0, %c0_1] : memref<1x8x128xf32, #tpu.memory_space<vmem>>, vector<1x8x128xf32>
    %1 = vector.shape_cast %0 : vector<1x8x128xf32> to vector<8x128xf32>
    %2 = vector.shape_cast %1 : vector<8x128xf32> to vector<1x8x128xf32>
    %3 = vector.broadcast %2 : vector<1x8x128xf32> to vector<2x8x128xf32>
    %c0_2 = arith.constant 0 : index
    %c0_3 = arith.constant 0 : index
    %c0_4 = arith.constant 0 : index
    %4 = vector.load %arg2[%c0_2, %c0_3, %c0_4] : memref<2x128x64xf32, #tpu.memory_space<vmem>>, vector<2x128x64xf32>
    "tpu.trace_start"() <{level = 10 : i32, message = "hnc,hcd->hnd"}> : () -> ()
    %cst = arith.constant dense<0.000000e+00> : vector<2x8x64xf32>
    %5 = tpu.matmul %3, %4, %cst {dimension_numbers = #tpu.dot_dimension_numbers<[2], [1], [1], [2], [0, 0, 0, 1, 1, 2], [0], [0]>} : vector<2x8x128xf32>, vector<2x128x64xf32>, vector<2x8x64xf32> -> vector<2x8x64xf32>
    "tpu.trace_stop"() : () -> ()
    %c0_5 = arith.constant 0 : index
    %c0_6 = arith.constant 0 : index
    %c0_7 = arith.constant 0 : index
    %6 = vector.load %arg3[%c0_5, %c0_6, %c0_7] : memref<2x128x64xf32, #tpu.memory_space<vmem>>, vector<2x128x64xf32>
    "tpu.trace_start"() <{level = 10 : i32, message = "hnc,hcd->hnd"}> : () -> ()
    %cst_8 = arith.constant dense<0.000000e+00> : vector<2x8x64xf32>
    %7 = tpu.matmul %3, %6, %cst_8 {dimension_numbers = #tpu.dot_dimension_numbers<[2], [1], [1], [2], [0, 0, 0, 1, 1, 2], [0], [0]>} : vector<2x8x128xf32>, vector<2x128x64xf32>, vector<2x8x64xf32> -> vector<2x8x64xf32>
    "tpu.trace_stop"() : () -> ()
    %c0_9 = arith.constant 0 : index
    %c0_10 = arith.constant 0 : index
    %c0_11 = arith.constant 0 : index
    %8 = vector.load %arg4[%c0_9, %c0_10, %c0_11] : memref<2x128x64xf32, #tpu.memory_space<vmem>>, vector<2x128x64xf32>
    "tpu.trace_start"() <{level = 10 : i32, message = "hnc,hcd->hnd"}> : () -> ()
    %cst_12 = arith.constant dense<0.000000e+00> : vector<2x8x64xf32>
    %9 = tpu.matmul %3, %8, %cst_12 {dimension_numbers = #tpu.dot_dimension_numbers<[2], [1], [1], [2], [0, 0, 0, 1, 1, 2], [0], [0]>} : vector<2x8x128xf32>, vector<2x128x64xf32>, vector<2x8x64xf32> -> vector<2x8x64xf32>
    "tpu.trace_stop"() : () -> ()
    "tpu.trace_start"() <{level = 10 : i32, message = "hqd,hkd->hqk"}> : () -> ()
    %cst_13 = arith.constant dense<0.000000e+00> : vector<2x8x8xf32>
    %10 = tpu.matmul %5, %7, %cst_13 {dimension_numbers = #tpu.dot_dimension_numbers<[2], [2], [1], [1], [0, 0, 0, 1, 1, 1], [0], [0]>} : vector<2x8x64xf32>, vector<2x8x64xf32>, vector<2x8x8xf32> -> vector<2x8x8xf32>
    "tpu.trace_stop"() : () -> ()
    %cst_14 = arith.constant dense<0xFF800000> : vector<2x8xf32>
    %11 = vector.multi_reduction <maximumf>, %10, %cst_14 [2] : vector<2x8x8xf32> to vector<2x8xf32>
    %12 = vector.shape_cast %11 : vector<2x8xf32> to vector<2x8x1xf32>
    %13 = vector.broadcast %12 : vector<2x8x1xf32> to vector<2x8x8xf32>
    %14 = arith.subf %10, %13 : vector<2x8x8xf32>
    %15 = math.exp %14 : vector<2x8x8xf32>
    %cst_15 = arith.constant dense<0.000000e+00> : vector<2x8xf32>
    %16 = vector.multi_reduction <add>, %15, %cst_15 [2] : vector<2x8x8xf32> to vector<2x8xf32>
    %17 = vector.shape_cast %16 : vector<2x8xf32> to vector<2x8x1xf32>
    %18 = tpu.reciprocal %17 {approx = true} : vector<2x8x1xf32> -> vector<2x8x1xf32>
    %19 = vector.broadcast %18 : vector<2x8x1xf32> to vector<2x8x8xf32>
    %20 = arith.mulf %15, %19 : vector<2x8x8xf32>
    "tpu.trace_start"() <{level = 10 : i32, message = "hqk,hkd->hqd"}> : () -> ()
    %cst_16 = arith.constant dense<0.000000e+00> : vector<2x8x64xf32>
    %21 = tpu.matmul %20, %9, %cst_16 {dimension_numbers = #tpu.dot_dimension_numbers<[2], [1], [1], [2], [0, 0, 0, 1, 1, 2], [0], [0]>} : vector<2x8x8xf32>, vector<2x8x64xf32>, vector<2x8x64xf32> -> vector<2x8x64xf32>
    "tpu.trace_stop"() : () -> ()
    %c0_17 = arith.constant 0 : index
    %c0_18 = arith.constant 0 : index
    %c0_19 = arith.constant 0 : index
    %22 = vector.load %arg5[%c0_17, %c0_18, %c0_19] : memref<2x64x128xf32, #tpu.memory_space<vmem>>, vector<2x64x128xf32>
    "tpu.trace_start"() <{level = 10 : i32, message = "hnd,hdc->hnc"}> : () -> ()
    %cst_20 = arith.constant dense<0.000000e+00> : vector<2x8x128xf32>
    %23 = tpu.matmul %21, %22, %cst_20 {dimension_numbers = #tpu.dot_dimension_numbers<[2], [1], [1], [2], [0, 0, 0, 1, 1, 2], [0], [0]>} : vector<2x8x64xf32>, vector<2x64x128xf32>, vector<2x8x128xf32> -> vector<2x8x128xf32>
    "tpu.trace_stop"() : () -> ()
    %cst_21 = arith.constant dense<0.000000e+00> : vector<8x128xf32>
    %24 = vector.multi_reduction <add>, %23, %cst_21 [0] : vector<2x8x128xf32> to vector<8x128xf32>
    %c0_22 = arith.constant 0 : index
    %c0_23 = arith.constant 0 : index
    %25 = vector.load %arg6[%c0_22, %c0_23] : memref<1x128xf32, #tpu.memory_space<vmem>>, vector<1x128xf32>
    %26 = vector.broadcast %25 : vector<1x128xf32> to vector<8x128xf32>
    %27 = arith.addf %24, %26 : vector<8x128xf32>
    %c0_24 = arith.constant 0 : index
    %c0_25 = arith.constant 0 : index
    %c0_26 = arith.constant 0 : index
    %28 = vector.load %arg7[%c0_24, %c0_25, %c0_26] : memref<1x8x128xf32, #tpu.memory_space<vmem>>, vector<1x8x128xf32>
    %29 = vector.shape_cast %28 : vector<1x8x128xf32> to vector<8x128xf32>
    %30 = vector.shape_cast %27 : vector<8x128xf32> to vector<1x8x128xf32>
    tpu.vector_store %arg7[%c0_24, %c0_25, %c0_26], %30 {strides = array<i32>} : memref<1x8x128xf32, #tpu.memory_space<vmem>>, vector<1x8x128xf32>,
    return
  }
  func.func @transform_0(%arg0: i32) -> (i32, i32, i32) {
    %c0_i32 = arith.constant 0 : i32
    %c0_i32_0 = arith.constant 0 : i32
    %c0_i32_1 = arith.constant 0 : i32
    return %arg0, %c0_i32, %c0_i32_0 : i32, i32, i32
  }
  func.func @transform_1(%arg0: i32) -> (i32, i32, i32) {
    %c0_i32 = arith.constant 0 : i32
    %c0_i32_0 = arith.constant 0 : i32
    %c0_i32_1 = arith.constant 0 : i32
    %c0_i32_2 = arith.constant 0 : i32
    return %c0_i32, %c0_i32_0, %c0_i32_1 : i32, i32, i32
  }
  func.func @transform_2(%arg0: i32) -> (i32, i32, i32) {
    %c0_i32 = arith.constant 0 : i32
    %c0_i32_0 = arith.constant 0 : i32
    %c0_i32_1 = arith.constant 0 : i32
    %c0_i32_2 = arith.constant 0 : i32
    return %c0_i32, %c0_i32_0, %c0_i32_1 : i32, i32, i32
  }
  func.func @transform_3(%arg0: i32) -> (i32, i32, i32) {
    %c0_i32 = arith.constant 0 : i32
    %c0_i32_0 = arith.constant 0 : i32
    %c0_i32_1 = arith.constant 0 : i32
    %c0_i32_2 = arith.constant 0 : i32
    return %c0_i32, %c0_i32_0, %c0_i32_1 : i32, i32, i32
  }
  func.func @transform_4(%arg0: i32) -> (i32, i32, i32) {
    %c0_i32 = arith.constant 0 : i32
    %c0_i32_0 = arith.constant 0 : i32
    %c0_i32_1 = arith.constant 0 : i32
    %c0_i32_2 = arith.constant 0 : i32
    return %c0_i32, %c0_i32_0, %c0_i32_1 : i32, i32, i32
  }
  func.func @transform_5(%arg0: i32) -> (i32, i32) {
    %c0_i32 = arith.constant 0 : i32
    %c0_i32_0 = arith.constant 0 : i32
    %c0_i32_1 = arith.constant 0 : i32
    return %c0_i32, %c0_i32_0 : i32, i32
  }
  func.func @transform_6(%arg0: i32) -> (i32, i32, i32) {
    %c0_i32 = arith.constant 0 : i32
    %c0_i32_0 = arith.constant 0 : i32
    %c0_i32_1 = arith.constant 0 : i32
    return %arg0, %c0_i32, %c0_i32_0 : i32, i32, i32
  }
}

</mosaic_0001>

<bundles_post_ra>
// kernel: tpu_custom_call.1
= control target key start
LH: loop header
LB: loop body
LE: loop exit
PB: predicated region body
PF: predicated region fallthrough
CT: control target
= control target key end

     0   :  { %11 = vsyncpa [#allocation3], 0  ;;  %s2610_s0 = inlined_call_operand.vmem [shape: f32[2,8,128], index: 0, kind: input, shape index: {}]   ;;  %s2611_s1 = inlined_call_operand.vmem [shape: f32[2,128,64], index: 1, kind: input, shape index: {}]   ;;  %s2612_s2 = inlined_call_operand.vmem [shape: f32[2,128,64], index: 2, kind: input, shape index: {}]   ;;  %s2613_s3 = inlined_call_operand.vmem [shape: f32[2,128,64], index: 3, kind: input, shape index: {}]   ;;  %s2614_s4 = inlined_call_operand.vmem [shape: f32[2,64,128], index: 4, kind: input, shape index: {}]   ;;  %s2615_s5 = inlined_call_operand.vmem [shape: f32[1,128], index: 5, kind: input, shape index: {}]   ;;  %s2616_s6 = inlined_call_operand.hbm [shape: f32[2,8,128], index: 6, kind: output, shape index: {}]  }
   0x1   :  { %13 = vsyncpa [#allocation3 + $0x1], 0  ;;  %s2067_s21 = smov 0   ;;  %s2069_s22 = smov 0  }
   0x2   :  { %s2071_s23 = smov 0   ;;  %s2073_s24 = smov 0  }
   0x3 LB: > { %s2088_s25 = sadd.s32 4294967295, %s2026_s24   ;;  %s1331_s26 = sadd.s32 4294967294, %s2026_s24   ;;  %s2026_s24 = sphi %s2073_s24, %s2622_s24   ;;  %s2022_s23 = sphi %s2071_s23, %s2621_s23   ;;  %s2018_s22 = sphi %s2069_s22, %s2620_s22   ;;  %s2014_s21 = sphi %s2067_s21, %s2619_s21  }
   0x4   : > { %s2092_s27 = sadd.s32 1, %s2026_s24   ;;  %s157_s28 = sadd.s32 1, %s2022_s23 }
   0x5   : > { %s154_s29 = ssub.s32 %s2026_s24, %s2092_s27  ;;  %p167_p0 = scmp.ne.s32.totalorder %s2022_s23, %s2018_s22 }
   0x6   : > { %p155_p1 = scmp.eq.s32.totalorder %s154_s29, 0  ;;  %p168_p2 = scmp.eq.s32.totalorder %s2088_s25, 1 }
   0x7   : > { %p173_p3 = scmp.ne.s32.totalorder %s2018_s22, %s2014_s21  ;;  %p174_p4 = scmp.eq.s32.totalorder %s1331_s26, 1 }
   0x8   : > { %s2103_s30 = scalar_select %p155_p1, %s2022_s23, %s157_s28  }
   0x9   : > { %p2105_p5 = por %p168_p2, %p167_p0  ;;  %p2109_p6 = por %p174_p4, %p173_p3 }
   0xa   : > { %p1334_p7 = scmp.ge.s32.totalorder %s2026_s24, 1  ;;  %p214_p8 = scmp.lt.s32.totalorder %s2026_s24, 3 }
   0xc   : > { %p215_p9 = pnand %p1334_p7, %p214_p8 }
   0xd   : > { %v248_v0 = vld [vmem:[%s2611_s1] sm:$0xff] (!%p215_p9)  ;;  %v249_v1 = vld [vmem:[%s2611_s1 + $0x8] sm:$0xff] (!%p215_p9)  ;;  %v2028_v3 = vmov (!%p215_p9), 0.0|0.0   ;;  %v250_v6 = vld [vmem:[%s2611_s1 + $0x10] sm:$0xff] (!%p215_p9)  ;;  %vm2029_vm0 = vmmov (!%p215_p9), 0   ;;  %v2030_v11 = vmov (!%p215_p9), 0.0  }
   0xe   : > { %218 = sbr.rel (%p215_p9) target bundleno = 1266 (0x4f2), region = 44  ;;  %v264_v2 = vld [vmem:[%s2611_s1 + $0x80] sm:$0xff] (!%p215_p9)  ;;  %1746 = vmatprep.subr.bf16.mxu0 (!%p215_p9), %v2028_v3  ;;  %1770 = vmatprep.subr.bf16.mxu1 (!%p215_p9), %v2028_v3  ;;  %v1747_v4 = vpack.c.bf16 (!%p215_p9), %v249_v1, %v248_v0  ;;  %v265_v5 = vld [vmem:[%s2611_s1 + $0x88] sm:$0xff] (!%p215_p9)  ;;  %v251_v7 = vld [vmem:[%s2611_s1 + $0x18] sm:$0xff] (!%p215_p9)  ;;  %p243_p10 = scmp.lt.s32.totalorder (!%p215_p9), %s2088_s25, 1  ;;  %vm764_vm1 = vcmask (!%p215_p9), 523264  }
   0xf   : > { %v1771_v8 = vpack.c.bf16 (!%p215_p9), %v265_v5, %v264_v2  ;;  %v266_v9 = vld [vmem:[%s2611_s1 + $0x90] sm:$0xff] (!%p215_p9)  ;;  %v267_v10 = vld [vmem:[%s2611_s1 + $0x98] sm:$0xff] (!%p215_p9)  ;;  %1510 = vmatprep.mubr.msk.f32.mxu0 (!%p215_p9), %vm2029_vm0, %v2030_v11  ;;  %1545 = vmatprep.mubr.msk.f32.mxu1 (!%p215_p9), %vm2029_vm0, %v2030_v11  ;;  %v1750_v12 = vpack.c.bf16 (!%p215_p9), %v251_v7, %v250_v6  ;;  %v252_v14 = vld [vmem:[%s2611_s1 + $0x20] sm:$0xff] (!%p215_p9)  ;;  %vm917_vm2 = vcmask (!%p215_p9), 64512   ;;  %s240_s13 = sand.u32 (!%p215_p9), 1, %s2018_s22  }
  0x10   : > { %1748 = vmatpush3.bf16.msra.mxu0 (!%p215_p9), %v1747_v4  ;;  %v1774_v13 = vpack.c.bf16 (!%p215_p9), %v267_v10, %v266_v9  ;;  %v253_v15 = vld [vmem:[%s2611_s1 + $0x28] sm:$0xff] (!%p215_p9)  ;;  %v268_v16 = vld [vmem:[%s2611_s1 + $0xa0] sm:$0xff] (!%p215_p9)  ;;  %v254_v20 = vld [vmem:[%s2611_s1 + $0x30] sm:$0xff] (!%p215_p9)  ;;  %s1259_s29 = scalar_lea.sflag (!%p215_p9), [#allocation3], %s240_s13 }
  0x11   : > { %1772 = vmatpush3.bf16.msra.mxu1 (!%p215_p9), %v1771_v8  ;;  %1749 = vmatprep.subr.bf16.mxu0 (!%p215_p9), %v2028_v3  ;;  %v269_v17 = vld [vmem:[%s2611_s1 + $0xa8] sm:$0xff] (!%p215_p9)  ;;  %v1753_v18 = vpack.c.bf16 (!%p215_p9), %v253_v15, %v252_v14  ;;  %v255_v21 = vld [vmem:[%s2611_s1 + $0x38] sm:$0xff] (!%p215_p9)  ;;  %v270_v22 = vld [vmem:[%s2611_s1 + $0xb0] sm:$0xff] (!%p215_p9) }
  0x12   : > { %1773 = vmatprep.subr.bf16.mxu1 (!%p215_p9), %v2028_v3  ;;  %v1777_v19 = vpack.c.bf16 (!%p215_p9), %v269_v17, %v268_v16  ;;  %v271_v23 = vld [vmem:[%s2611_s1 + $0xb8] sm:$0xff] (!%p215_p9)  ;;  %v1756_v24 = vpack.c.bf16 (!%p215_p9), %v255_v21, %v254_v20  ;;  %v256_v26 = vld [vmem:[%s2611_s1 + $0x40] sm:$0xff] (!%p215_p9)  ;;  %v257_v27 = vld [vmem:[%s2611_s1 + $0x48] sm:$0xff] (!%p215_p9) }
  0x13   : > { %v1780_v25 = vpack.c.bf16 (!%p215_p9), %v271_v23, %v270_v22  ;;  %v272_v28 = vld [vmem:[%s2611_s1 + $0xc0] sm:$0xff] (!%p215_p9)  ;;  %v273_v29 = vld [vmem:[%s2611_s1 + $0xc8] sm:$0xff] (!%p215_p9)  ;;  %v1759_v30 = vpack.c.bf16 (!%p215_p9), %v257_v27, %v256_v26  ;;  %v258_v32 = vld [vmem:[%s2611_s1 + $0x50] sm:$0xff] (!%p215_p9) }
  0x14   : > { %1751 = vmatpush3.bf16.msra.mxu0 (!%p215_p9), %v1750_v12  ;;  %v1783_v31 = vpack.c.bf16 (!%p215_p9), %v273_v29, %v272_v28  ;;  %v259_v33 = vld [vmem:[%s2611_s1 + $0x58] sm:$0xff] (!%p215_p9)  ;;  %v274_v34 = vld [vmem:[%s2611_s1 + $0xd0] sm:$0xff] (!%p215_p9)  ;;  %v260_v38 = vld [vmem:[%s2611_s1 + $0x60] sm:$0xff] (!%p215_p9) }
  0x15   : > { %1775 = vmatpush3.bf16.msra.mxu1 %v1774_v13  ;;  %1752 = vmatprep.subr.bf16.mxu0 %v2028_v3  ;;  %v275_v35 = vld [vmem:[%s2611_s1 + $0xd8] sm:$0xff]  ;;  %v1762_v36 = vpack.c.bf16 %v259_v33, %v258_v32  ;;  %v261_v39 = vld [vmem:[%s2611_s1 + $0x68] sm:$0xff]  ;;  %v276_v40 = vld [vmem:[%s2611_s1 + $0xe0] sm:$0xff]  ;;  %s244_s20 = scalar_select %p243_p10, %s2088_s25, 1 }
  0x16   : > { %1776 = vmatprep.subr.bf16.mxu1 %v2028_v3  ;;  %v1786_v37 = vpack.c.bf16 %v275_v35, %v274_v34  ;;  %v277_v41 = vld [vmem:[%s2611_s1 + $0xe8] sm:$0xff]  ;;  %v1765_v42 = vpack.c.bf16 %v261_v39, %v260_v38  ;;  %v262_v44 = vld [vmem:[%s2611_s1 + $0x70] sm:$0xff]  ;;  %v263_v45 = vld [vmem:[%s2611_s1 + $0x78] sm:$0xff] }
  0x17   : > { %v1789_v43 = vpack.c.bf16 %v277_v41, %v276_v40  ;;  %v278_v46 = vld [vmem:[%s2611_s1 + $0xf0] sm:$0xff]  ;;  %v279_v47 = vld [vmem:[%s2611_s1 + $0xf8] sm:$0xff]  ;;  %s1336_s14 = sshll.u32 %s244_s20, 3  ;;  %v1768_v48 = vpack.c.bf16 %v263_v45, %v262_v44  ;;  %v420_v50 = vld [vmem:[%s2612_s2] sm:$0xff] }
  0x18   : > { %1754 = vmatpush3.bf16.msra.mxu0 %v1753_v18  ;;  %v1792_v49 = vpack.c.bf16 %v279_v47, %v278_v46  ;;  %s246_s17 = scalar_lea.vmem %s2610_s0, %s1336_s14  ;;  %v421_v51 = vld [vmem:[%s2612_s2 + $0x8] sm:$0xff]  ;;  %v436_v52 = vld [vmem:[%s2612_s2 + $0x80] sm:$0xff]  ;;  %v422_v57 = vld [vmem:[%s2612_s2 + $0x10] sm:$0xff]  ;;  %s1335_s14 = sshll.u32 %s240_s13, 3 }
  0x19   : > { %1778 = vmatpush3.bf16.msra.mxu1 %v1777_v19  ;;  %1755 = vmatprep.subr.bf16.mxu0 %v2028_v3  ;;  %v437_v53 = vld [vmem:[%s2612_s2 + $0x88] sm:$0xff]  ;;  %v2248_v54 = vld [vmem:[%s246_s17] sm:$0xff]  ;;  %v1795_v55 = vpack.c.bf16 %v421_v51, %v420_v50  ;;  %v423_v58 = vld [vmem:[%s2612_s2 + $0x18] sm:$0xff]  ;;  %s1347_s17 = sshll.u32 %s2088_s25, 7  ;;  %s242_s18 = scalar_lea.vmem [#allocation2], %s1335_s14 }
  0x1a   : > { %1779 = vmatprep.subr.bf16.mxu1 %v2028_v3  ;;  %v1819_v56 = vpack.c.bf16 %v437_v53, %v436_v52  ;;  %v438_v59 = vld [vmem:[%s2612_s2 + $0x90] sm:$0xff]  ;;  %v439_v60 = vld [vmem:[%s2612_s2 + $0x98] sm:$0xff]  ;;  %v1798_v61 = vpack.c.bf16 %v423_v58, %v422_v57  ;;  %v424_v63 = vld [vmem:[%s2612_s2 + $0x20] sm:$0xff]  ;;  %s1272_s19 = sshll.u32 %s242_s18, 4  ;;  %s2568_s20 = scalar_lea.hbm %s2616_s6, %s1347_s17  ;;  %s2570_s19 = int_to_ptr.vmem [resolvable:$true] %s1272_s19 }
  0x1b   : > { %v1822_v62 = vpack.c.bf16 %v439_v60, %v438_v59  ;;  %v425_v0 = vld [vmem:[%s2612_s2 + $0x28] sm:$0xff]  ;;  %v440_v1 = vld [vmem:[%s2612_s2 + $0xa0] sm:$0xff]  ;;  %v426_v6 = vld [vmem:[%s2612_s2 + $0x30] sm:$0xff]  ;;  %s1964_s9 = scalar_lea.vmem %s2570_s19, 128  ;;  %s2031_s25 = smov [#allocation2]  }
  0x1c   : > { %1757 = vmatpush3.bf16.msra.mxu0 %v1756_v24  ;;  %v441_v2 = vld [vmem:[%s2612_s2 + $0xa8] sm:$0xff]  ;;  %v1801_v4 = vpack.c.bf16 %v425_v0, %v424_v63  ;;  %v427_v7 = vld [vmem:[%s2612_s2 + $0x38] sm:$0xff]  ;;  %v442_v8 = vld [vmem:[%s2612_s2 + $0xb0] sm:$0xff]  ;;  %p1965_p11 = scmp.ne.s32.totalorder %s2570_s19, %s1964_s9  ;;  %s1968_s10 = sshll.u32 %s2031_s25, 4  ;;  %s1969_s10 = int_to_ptr.vmem [resolvable:$false] %s1968_s10 }
  0x1d   : > { %1781 = vmatpush3.bf16.msra.mxu1 %v1780_v25  ;;  %1758 = vmatprep.subr.bf16.mxu0 %v2028_v3  ;;  %v1825_v5 = vpack.c.bf16 %v441_v2, %v440_v1  ;;  %v443_v9 = vld [vmem:[%s2612_s2 + $0xb8] sm:$0xff]  ;;  %v1804_v10 = vpack.c.bf16 %v427_v7, %v426_v6  ;;  %v428_v13 = vld [vmem:[%s2612_s2 + $0x40] sm:$0xff]  ;;  %v429_v14 = vld [vmem:[%s2612_s2 + $0x48] sm:$0xff]  ;;  %s1970_s11 = scalar_lea.vmem %s1969_s10, 256  ;;  %p1971_p0 = scmp.lt.s32.totalorder %s2570_s19, %s1969_s10 }
  0x1e   : > { %1782 = vmatprep.subr.bf16.mxu1 %v2028_v3  ;;  %v1828_v12 = vpack.c.bf16 %v443_v9, %v442_v8  ;;  %v444_v15 = vld [vmem:[%s2612_s2 + $0xc0] sm:$0xff]  ;;  %v445_v16 = vld [vmem:[%s2612_s2 + $0xc8] sm:$0xff]  ;;  %v1807_v17 = vpack.c.bf16 %v429_v14, %v428_v13  ;;  %v430_v19 = vld [vmem:[%s2612_s2 + $0x50] sm:$0xff]  ;;  %p1966_p12 = pnand %p1965_p11, %p2105_p5  ;;  %p1972_p1 = scmp.lt.s32.totalorder %s1970_s11, %s1964_s9 }
  0x1f   : > { %v1831_v18 = vpack.c.bf16 %v445_v16, %v444_v15  ;;  %v431_v20 = vld [vmem:[%s2612_s2 + $0x58] sm:$0xff]  ;;  %v446_v21 = vld [vmem:[%s2612_s2 + $0xd0] sm:$0xff]  ;;  %v432_v25 = vld [vmem:[%s2612_s2 + $0x60] sm:$0xff] }
  0x20   : > { %1760 = vmatpush3.bf16.msra.mxu0 %v1759_v30  ;;  %v447_v22 = vld [vmem:[%s2612_s2 + $0xd8] sm:$0xff]  ;;  %v1810_v23 = vpack.c.bf16 %v431_v20, %v430_v19  ;;  %v433_v26 = vld [vmem:[%s2612_s2 + $0x68] sm:$0xff]  ;;  %v448_v27 = vld [vmem:[%s2612_s2 + $0xe0] sm:$0xff]  ;;  %p1967_p13 = pneg %p1966_p12  ;;  %p1973_p2 = por %p1972_p1, %p1971_p0 }
  0x21   : > { %1784 = vmatpush3.bf16.msra.mxu1 %v1783_v31  ;;  %1761 = vmatprep.subr.bf16.mxu0 %v2028_v3  ;;  %v1834_v24 = vpack.c.bf16 %v447_v22, %v446_v21  ;;  %v449_v28 = vld [vmem:[%s2612_s2 + $0xe8] sm:$0xff]  ;;  %v1813_v29 = vpack.c.bf16 %v433_v26, %v432_v25  ;;  %v434_v31 = vld [vmem:[%s2612_s2 + $0x70] sm:$0xff]  ;;  %v435_v32 = vld [vmem:[%s2612_s2 + $0x78] sm:$0xff] }
  0x22   : > { %1785 = vmatprep.subr.bf16.mxu1 %v2028_v3  ;;  %v1837_v30 = vpack.c.bf16 %v449_v28, %v448_v27  ;;  %v450_v33 = vld [vmem:[%s2612_s2 + $0xf0] sm:$0xff]  ;;  %v451_v34 = vld [vmem:[%s2612_s2 + $0xf8] sm:$0xff]  ;;  %v1816_v35 = vpack.c.bf16 %v435_v32, %v434_v31  ;;  %v593_v38 = vld [vmem:[%s2613_s3 + $0x8] sm:$0xff]  ;;  %p1974_p3 = pnand %p1973_p2, %p1967_p13 }
  0x23   : > { %v608_v39 = vld [vmem:[%s2613_s3 + $0x80] sm:$0xff]  ;;  %v609_v40 = vld [vmem:[%s2613_s3 + $0x88] sm:$0xff]  ;;  %v595_v44 = vld [vmem:[%s2613_s3 + $0x18] sm:$0xff] }
  0x24   : > { %1763 = vmatpush3.bf16.msra.mxu0 %v1762_v36  ;;  %v1840_v36 = vpack.c.bf16 %v451_v34, %v450_v33  ;;  %v610_v45 = vld [vmem:[%s2613_s3 + $0x90] sm:$0xff]  ;;  %v611_v47 = vld [vmem:[%s2613_s3 + $0x98] sm:$0xff]  ;;  %v597_v50 = vld [vmem:[%s2613_s3 + $0x28] sm:$0xff] }
  0x25   : > { %1787 = vmatpush3.bf16.msra.mxu1 %v1786_v37  ;;  %1764 = vmatprep.subr.bf16.mxu0 %v2028_v3  ;;  %v592_v37 = vld [vmem:[%s2613_s3] sm:$0xff]  ;;  %v613_v53 = vld [vmem:[%s2613_s3 + $0xa8] sm:$0xff]  ;;  %v614_v58 = vld [vmem:[%s2613_s3 + $0xb0] sm:$0xff] }
  0x26   : > { %1788 = vmatprep.subr.bf16.mxu1 %v2028_v3  ;;  %v1843_v41 = vpack.c.bf16 %v593_v38, %v592_v37  ;;  %v612_v51 = vld [vmem:[%s2613_s3 + $0xa0] sm:$0xff]  ;;  %v615_v59 = vld [vmem:[%s2613_s3 + $0xb8] sm:$0xff]  ;;  %v601_v63 = vld [vmem:[%s2613_s3 + $0x48] sm:$0xff] }
  0x27   : > { %v1873_v57 = vpack.c.bf16 %v613_v53, %v612_v51  ;;  %v616_v0 = vld [vmem:[%s2613_s3 + $0xc0] sm:$0xff]  ;;  %v617_v1 = vld [vmem:[%s2613_s3 + $0xc8] sm:$0xff]  ;;  %v603_v6 = vld [vmem:[%s2613_s3 + $0x58] sm:$0xff] }
  0x28   : > { %1766 = vmatpush3.bf16.msra.mxu0 %v1765_v42  ;;  %v1867_v42 = vpack.c.bf16 %v609_v40, %v608_v39  ;;  %v618_v7 = vld [vmem:[%s2613_s3 + $0xd0] sm:$0xff]  ;;  %v619_v8 = vld [vmem:[%s2613_s3 + $0xd8] sm:$0xff]  ;;  %v605_v13 = vld [vmem:[%s2613_s3 + $0x68] sm:$0xff] }
  0x29   : > { %1790 = vmatpush3.bf16.msra.mxu1 %v1789_v43  ;;  %1767 = vmatprep.subr.bf16.mxu0 %v2028_v3  ;;  %v594_v43 = vld [vmem:[%s2613_s3 + $0x10] sm:$0xff]  ;;  %v620_v14 = vld [vmem:[%s2613_s3 + $0xe0] sm:$0xff]  ;;  %v621_v15 = vld [vmem:[%s2613_s3 + $0xe8] sm:$0xff] }
  0x2a   : > { %1791 = vmatprep.subr.bf16.mxu1 %v2028_v3  ;;  %v1846_v46 = vpack.c.bf16 %v595_v44, %v594_v43  ;;  %v607_v19 = vld [vmem:[%s2613_s3 + $0x78] sm:$0xff]  ;;  %v622_v20 = vld [vmem:[%s2613_s3 + $0xf0] sm:$0xff]  ;;  %v1086_v53 = vld [vmem:[%s2614_s4] sm:$0xff] }
  0x2b   : > { %v623_v21 = vld [vmem:[%s2613_s3 + $0xf8] sm:$0xff] }
  0x2c   : > { %1769 = vmatpush3.bf16.msra.mxu0 %v1768_v48  ;;  %v1870_v48 = vpack.c.bf16 %v611_v47, %v610_v45 }
  0x2d   : > { %1793 = vmatpush3.bf16.msra.mxu1 %v1792_v49  ;;  %1794 = vmatprep.subr.bf16.mxu0 %v2028_v3  ;;  %v596_v49 = vld [vmem:[%s2613_s3 + $0x20] sm:$0xff] }
  0x2e   : > { %1818 = vmatprep.subr.bf16.mxu1 %v2028_v3  ;;  %v1849_v52 = vpack.c.bf16 %v597_v50, %v596_v49 }
  0x2f   : > { %1511 = vmatmul.mubr.f32.vlgmr.msra.gmra.mrb[0].mxu0 %v2248_v54 }
  0x30   : > { %1546 = vmatmul.mubr.f32.vlgmr.msra.gmra.mrb[0].mxu1 %v2248_v54  ;;  %1796 = vmatpush3.bf16.msra.mxu0 %v1795_v55  ;;  %v598_v55 = vld [vmem:[%s2613_s3 + $0x30] sm:$0xff] }
  0x31   : > { %1820 = vmatpush3.bf16.msra.mxu1 %v1819_v56  ;;  %1797 = vmatprep.subr.bf16.mxu0 %v2028_v3  ;;  %v599_v56 = vld [vmem:[%s2613_s3 + $0x38] sm:$0xff] }
  0x32   : > { %1821 = vmatprep.subr.bf16.mxu1 %v2028_v3  ;;  %1580 = vmatprep.mubr.msk.f32.mxu0 %vm2029_vm0, %v2030_v11  ;;  %v1852_v60 = vpack.c.bf16 %v599_v56, %v598_v55  ;;  %v1087_v55 = vld [vmem:[%s2614_s4 + $0x8] sm:$0xff] }
  0x33   : > { %1615 = vmatprep.mubr.msk.f32.mxu1 %vm2029_vm0, %v2030_v11 }
  0x34   : > { %1799 = vmatpush3.bf16.msra.mxu0 %v1798_v61  ;;  %v1876_v61 = vpack.c.bf16 %v615_v59, %v614_v58  ;;  %v1088_v58 = vld [vmem:[%s2614_s4 + $0x10] sm:$0xff] }
  0x35   : > { %1823 = vmatpush3.bf16.msra.mxu1 %v1822_v62  ;;  %1800 = vmatprep.subr.bf16.mxu0 %v2028_v3  ;;  %v600_v62 = vld [vmem:[%s2613_s3 + $0x40] sm:$0xff] }
  0x36   : > { %1824 = vmatprep.subr.bf16.mxu1 %v2028_v3  ;;  %v1855_v2 = vpack.c.bf16 %v601_v63, %v600_v62  ;;  %v1095_v62 = vld [vmem:[%s2614_s4 + $0x48] sm:$0xff] }
  0x38   : > { %1802 = vmatpush3.bf16.msra.mxu0 %v1801_v4  ;;  %v1879_v4 = vpack.c.bf16 %v617_v1, %v616_v0 }
  0x39   : > { %1826 = vmatpush3.bf16.msra.mxu1 %v1825_v5  ;;  %1803 = vmatprep.subr.bf16.mxu0 %v2028_v3  ;;  %v602_v5 = vld [vmem:[%s2613_s3 + $0x50] sm:$0xff] }
  0x3a   : > { %1827 = vmatprep.subr.bf16.mxu1 %v2028_v3  ;;  %v1858_v9 = vpack.c.bf16 %v603_v6, %v602_v5  ;;  %v1091_v5 = vld [vmem:[%s2614_s4 + $0x28] sm:$0xff]  ;;  %v1096_v6 = vld [vmem:[%s2614_s4 + $0x50] sm:$0xff] }
  0x3c   : > { %1805 = vmatpush3.bf16.msra.mxu0 %v1804_v10  ;;  %v1882_v10 = vpack.c.bf16 %v619_v8, %v618_v7  ;;  %v1097_v7 = vld [vmem:[%s2614_s4 + $0x58] sm:$0xff] }
  0x3d   : > { %1829 = vmatpush3.bf16.msra.mxu1 %v1828_v12  ;;  %1806 = vmatprep.subr.bf16.mxu0 %v2028_v3  ;;  %v604_v12 = vld [vmem:[%s2613_s3 + $0x60] sm:$0xff] }
  0x3e   : > { %1830 = vmatprep.subr.bf16.mxu1 %v2028_v3  ;;  %v1861_v16 = vpack.c.bf16 %v605_v13, %v604_v12  ;;  %v1093_v12 = vld [vmem:[%s2614_s4 + $0x38] sm:$0xff]  ;;  %v1098_v13 = vld [vmem:[%s2614_s4 + $0x60] sm:$0xff] }
  0x40   : > { %1808 = vmatpush3.bf16.msra.mxu0 %v1807_v17  ;;  %v1885_v17 = vpack.c.bf16 %v621_v15, %v620_v14  ;;  %v1099_v14 = vld [vmem:[%s2614_s4 + $0x68] sm:$0xff] }
  0x41   : > { %1832 = vmatpush3.bf16.msra.mxu1 %v1831_v18  ;;  %1809 = vmatprep.subr.bf16.mxu0 %v2028_v3  ;;  %v606_v18 = vld [vmem:[%s2613_s3 + $0x70] sm:$0xff] }
  0x42   : > { %1833 = vmatprep.subr.bf16.mxu1 %v2028_v3  ;;  %v1864_v22 = vpack.c.bf16 %v607_v19, %v606_v18 }
  0x44   : > { %1811 = vmatpush3.bf16.msra.mxu0 %v1810_v23  ;;  %v1888_v23 = vpack.c.bf16 %v623_v21, %v622_v20 }
  0x45   : > { %1835 = vmatpush3.bf16.msra.mxu1 %v1834_v24  ;;  %1812 = vmatprep.subr.bf16.mxu0 %v2028_v3 }
  0x46   : > { %1836 = vmatprep.subr.bf16.mxu1 %v2028_v3 }
  0x48   : > { %1814 = vmatpush3.bf16.msra.mxu0 %v1813_v29 }
  0x49   : > { %1838 = vmatpush3.bf16.msra.mxu1 %v1837_v30  ;;  %1815 = vmatprep.subr.bf16.mxu0 %v2028_v3 }
  0x4a   : > { %1839 = vmatprep.subr.bf16.mxu1 %v2028_v3 }
  0x4c   : > { %1817 = vmatpush3.bf16.msra.mxu0 %v1816_v35 }
  0x4d   : > { %1841 = vmatpush3.bf16.msra.mxu1 %v1840_v36  ;;  %1842 = vmatprep.subr.bf16.mxu0 %v2028_v3 }
  0x4e   : > { %1866 = vmatprep.subr.bf16.mxu1 %v2028_v3 }
  0x4f   : > { %1581 = vmatmul.mubr.f32.vlgmr.msra.gmra.mrb[2].mxu0 %v2248_v54 }
  0x50   : > { %1616 = vmatmul.mubr.f32.vlgmr.msra.gmra.mrb[2].mxu1 %v2248_v54  ;;  %1844 = vmatpush3.bf16.msra.mxu0 %v1843_v41 }
  0x51   : > { %1868 = vmatpush3.bf16.msra.mxu1 %v1867_v42  ;;  %1845 = vmatprep.subr.bf16.mxu0 %v2028_v3 }
  0x52   : > { %1869 = vmatprep.subr.bf16.mxu1 %v2028_v3  ;;  %1650 = vmatprep.mubr.msk.f32.mxu0 %vm2029_vm0, %v2030_v11 }
  0x53   : > { %1685 = vmatprep.mubr.msk.f32.mxu1 %vm2029_vm0, %v2030_v11 }
  0x54   : > { %1847 = vmatpush3.bf16.msra.mxu0 %v1846_v46 }
  0x55   : > { %1871 = vmatpush3.bf16.msra.mxu1 %v1870_v48  ;;  %1848 = vmatprep.subr.bf16.mxu0 %v2028_v3 }
  0x56   : > { %1872 = vmatprep.subr.bf16.mxu1 %v2028_v3 }
  0x58   : > { %1850 = vmatpush3.bf16.msra.mxu0 %v1849_v52 }
  0x59   : > { %1874 = vmatpush3.bf16.msra.mxu1 %v1873_v57  ;;  %1851 = vmatprep.subr.bf16.mxu0 %v2028_v3  ;;  %v1891_v57 = vpack.c.bf16 %v1087_v55, %v1086_v53 }
  0x5a   : > { %1875 = vmatprep.subr.bf16.mxu1 %v2028_v3 }
  0x5c   : > { %1853 = vmatpush3.bf16.msra.mxu0 %v1852_v60  ;;  %v1089_v60 = vld [vmem:[%s2614_s4 + $0x18] sm:$0xff] }
  0x5d   : > { %1877 = vmatpush3.bf16.msra.mxu1 %v1876_v61  ;;  %1854 = vmatprep.subr.bf16.mxu0 %v2028_v3  ;;  %v1094_v61 = vld [vmem:[%s2614_s4 + $0x40] sm:$0xff]  ;;  %v1894_v0 = vpack.c.bf16 %v1089_v60, %v1088_v58 }
  0x5e   : > { %1878 = vmatprep.subr.bf16.mxu1 %v2028_v3  ;;  %v1903_v1 = vpack.c.bf16 %v1095_v62, %v1094_v61 }
  0x60   : > { %1856 = vmatpush3.bf16.msra.mxu0 %v1855_v2  ;;  %v1090_v2 = vld [vmem:[%s2614_s4 + $0x20] sm:$0xff] }
  0x61   : > { %1880 = vmatpush3.bf16.msra.mxu1 %v1879_v4  ;;  %1857 = vmatprep.subr.bf16.mxu0 %v2028_v3  ;;  %v1897_v8 = vpack.c.bf16 %v1091_v5, %v1090_v2 }
  0x62   : > { %1881 = vmatprep.subr.bf16.mxu1 %v2028_v3 }
  0x64   : > { %1859 = vmatpush3.bf16.msra.mxu0 %v1858_v9  ;;  %v1906_v9 = vpack.c.bf16 %v1097_v7, %v1096_v6 }
  0x65   : > { %1883 = vmatpush3.bf16.msra.mxu1 %v1882_v10  ;;  %1860 = vmatprep.subr.bf16.mxu0 %v2028_v3  ;;  %v1092_v10 = vld [vmem:[%s2614_s4 + $0x30] sm:$0xff] }
  0x66   : > { %1884 = vmatprep.subr.bf16.mxu1 %v2028_v3  ;;  %v1900_v15 = vpack.c.bf16 %v1093_v12, %v1092_v10 }
  0x68   : > { %1862 = vmatpush3.bf16.msra.mxu0 %v1861_v16  ;;  %v1909_v16 = vpack.c.bf16 %v1099_v14, %v1098_v13 }
  0x69   : > { %1886 = vmatpush3.bf16.msra.mxu1 %v1885_v17  ;;  %1863 = vmatprep.subr.bf16.mxu0 %v2028_v3  ;;  %v1100_v17 = vld [vmem:[%s2614_s4 + $0x70] sm:$0xff] }
  0x6a   : > { %1887 = vmatprep.subr.bf16.mxu1 %v2028_v3 }
  0x6c   : > { %1865 = vmatpush3.bf16.msra.mxu0 %v1864_v22 }
  0x6d   : > { %1889 = vmatpush3.bf16.msra.mxu1 %v1888_v23  ;;  %1688 = vmatprep.subr.mxu0 %v2030_v11 }
  0x6e   : > { %1693 = vmatprep.subr.mxu1 %v2030_v11 }
  0x6f   : > { %1651 = vmatmul.mubr.f32.vlgmr.msra.gmra.mrb[4].mxu0 %v2248_v54 }
  0x70   : > { %1686 = vmatmul.mubr.f32.vlgmr.msra.gmra.mrb[4].mxu1 %v2248_v54  ;;  %1690 = vmatprep.mubr.msk.f32.mxu0 %vm2029_vm0, %v2030_v11 }
  0x71   : > { %1695 = vmatprep.mubr.msk.f32.mxu1 %vm2029_vm0, %v2030_v11 }
 0x102   : > { %v346_v24 = vpop.f32.mrb[0].mxu0 }
 0x103   : > { %v1512_v25 = vpop.f32.mrb[1].mxu0  ;;  %v416_v26 = vpop.f32.mrb[0].mxu1 }
 0x104   : > { %v1547_v27 = vpop.f32.mrb[1].mxu1  ;;  %v1345_v25 = vld [vmem:[%s2615_s5] ss:$0 sm:$0xff] }
 0x122   : > { %v518_v28 = vpop.f32.mrb[2].mxu0 }
 0x123   : > { %v588_v29 = vpop.f32.mrb[2].mxu1  ;;  %v1582_v30 = vpop.f32.mrb[3].mxu0  ;;  %1689 = vmatpush3.xpose.msk.msra.mxu0 %vm764_vm1, %v518_v28 }
 0x124   : > { %1694 = vmatpush3.xpose.msk.msra.mxu1 %vm764_vm1, %v588_v29  ;;  %v1617_v31 = vpop.f32.mrb[3].mxu1  ;;  %1698 = vmatprep.subr.mxu0 %v2030_v11 }
 0x125   : > { %1703 = vmatprep.subr.mxu1 %v2030_v11 }
 0x126   : > { %1691 = vmatmul.mubr.msk.f32.vlgmr.msra.gmra.mrb[6].mxu0 %vm764_vm1, %v346_v24 }
 0x127   : > { %1696 = vmatmul.mubr.msk.f32.vlgmr.msra.gmra.mrb[6].mxu1 %vm764_vm1, %v416_v26  ;;  %1700 = vmatprep.mubr.msk.f32.mxu0 %vm2029_vm0, %v2030_v11 }
 0x128   : > { %1705 = vmatprep.mubr.msk.f32.mxu1 %vm2029_vm0, %v2030_v11 }
 0x142   : > { %v690_v54 = vpop.f32.mrb[4].mxu0 }
 0x143   : > { %v1652_v32 = vpop.f32.mrb[5].mxu0  ;;  %v760_v33 = vpop.f32.mrb[4].mxu1  ;;  %1699 = vmatpush3.msra.mxu0 %v690_v54 }
 0x144   : > { %v1687_v34 = vpop.f32.mrb[5].mxu1  ;;  %1704 = vmatpush3.msra.mxu1 %v760_v33  ;;  %1890 = vmatprep.subr.bf16.mxu0 %v2028_v3 }
 0x145   : > { %1902 = vmatprep.subr.bf16.mxu1 %v2028_v3 }
 0x1f9   : > { %v837_v35 = vpop.f32.mrb[6].mxu0 }
 0x1fa   : > { %v913_v36 = vpop.f32.mrb[6].mxu1  ;;  %v1692_v37 = vpop.f32.mrb[7].mxu0  ;;  %v918_v38 = vsel %vm917_vm2, %v837_v35, -inf }
 0x1fb   : > { %v1697_v39 = vpop.f32.mrb[7].mxu1  ;;  %919 = vmax.xlane.f32.xlu0 %v918_v38  ;;  %v921_v40 = vsel %vm917_vm2, %v913_v36, -inf }
 0x1ff   : > { %922 = vmax.xlane.f32.xlu0 %v921_v40 }
 0x288   : > { %v920_v41 = vpop.xlane.xlu0 %919 }
 0x289   : > { %v924_v42 = vsub.f32 %v837_v35, %v920_v41 }
 0x28b   : > { %v926_v43 = vmul.f32 1.442695, %v924_v42 }
 0x28c   : > { %v923_v44 = vpop.xlane.xlu0 %922 }
 0x28d   : > { %1956 = vpow2.f32 %v926_v43  ;;  %v925_v45 = vsub.f32 %v913_v36, %v923_v44 }
 0x28f   : > { %v928_v46 = vmul.f32 1.442695, %v925_v45 }
 0x291   : > { %1958 = vpow2.f32 %v928_v46 }
 0x297   : > { %v1957_v47 = vpop.eup %1956 }
 0x298   : > { %v930_v48 = vsel %vm917_vm2, %v1957_v47, 0.0 }
 0x299   : > { %931 = vadd.xlane.f32.xlu1 %v930_v48 }
 0x29b   : > { %v1959_v49 = vpop.eup %1958 }
 0x29c   : > { %v933_v50 = vsel %vm917_vm2, %v1959_v49, 0.0 }
 0x29d   : > { %934 = vadd.xlane.f32.xlu1 %v933_v50 }
 0x326   : > { %v932_v51 = vpop.xlane.xlu1 %931 }
 0x327   : > { %1960 = vrcp.f32 %v932_v51 }
 0x32a   : > { %v935_v52 = vpop.xlane.xlu1 %934 }
 0x32b   : > { %1962 = vrcp.f32 %v935_v52 }
 0x331   : > { %v1961_v56 = vpop.eup %1960 }
 0x332   : > { %v938_v59 = vmul.f32 %v1961_v56, %v1957_v47 }
 0x334   : > { %1701 = vmatmul.mubr.msk.f32.vlgmr.msra.gmra.mrb[8].mxu0 %vm917_vm2, %v938_v59 }
 0x335   : > { %v1963_v63 = vpop.eup %1962  ;;  %1892 = vmatpush3.bf16.msra.mxu0 %v1891_v57  ;;  %1724 = vmatprep.mubr.msk.f32.mxu0 %vm2029_vm0, %v2030_v11 }
 0x336   : > { %v939_v4 = vmul.f32 %v1963_v63, %v1959_v49  ;;  %1893 = vmatprep.subr.bf16.mxu0 %v2028_v3 }
 0x338   : > { %1706 = vmatmul.mubr.msk.f32.vlgmr.msra.gmra.mrb[8].mxu1 %vm917_vm2, %v939_v4 }
 0x339   : > { %1895 = vmatpush3.bf16.msra.mxu0 %v1894_v0  ;;  %1904 = vmatpush3.bf16.msra.mxu1 %v1903_v1 }
 0x33a   : > { %1896 = vmatprep.subr.bf16.mxu0 %v2028_v3  ;;  %1905 = vmatprep.subr.bf16.mxu1 %v2028_v3 }
 0x33b   : > { %1743 = vmatprep.mubr.msk.f32.mxu1 %vm2029_vm0, %v2030_v11  ;;  %v1101_v11 = vld [vmem:[%s2614_s4 + $0x78] sm:$0xff] }
 0x33c   : > { %v1912_v18 = vpack.c.bf16 %v1101_v11, %v1100_v17 }
 0x33d   : > { %1898 = vmatpush3.bf16.msra.mxu0 %v1897_v8  ;;  %1907 = vmatpush3.bf16.msra.mxu1 %v1906_v9 }
 0x33e   : > { %1899 = vmatprep.subr.bf16.mxu0 %v2028_v3  ;;  %1908 = vmatprep.subr.bf16.mxu1 %v2028_v3 }
 0x341   : > { %1901 = vmatpush3.bf16.msra.mxu0 %v1900_v15  ;;  %1910 = vmatpush3.bf16.msra.mxu1 %v1909_v16 }
 0x342   : > { %1911 = vmatprep.subr.bf16.mxu1 %v2028_v3 }
 0x345   : > { %1913 = vmatpush3.bf16.msra.mxu1 %v1912_v18 }
 0x407   : > { %v1009_v19 = vpop.f32.mrb[8].mxu0 }
 0x408   : > { %v1702_v20 = vpop.f32.mrb[9].mxu0  ;;  %1725 = vmatmul.mubr.msk.f32.vlgmr.msra.gmra.mrb[10].mxu0 %vm764_vm1, %v1009_v19 }
 0x40b   : > { %v1082_v21 = vpop.f32.mrb[8].mxu1 }
 0x40c   : > { %v1707_v22 = vpop.f32.mrb[9].mxu1  ;;  %1744 = vmatmul.mubr.msk.f32.vlgmr.msra.gmra.mrb[10].mxu1 %vm764_vm1, %v1082_v21 }
 0x4db   : > { %v1171_v3 = vpop.f32.mrb[10].mxu0 }
 0x4dc   : > { %v1726_v23 = vpop.f32.mrb[11].mxu0 }
 0x4df   : > { %v1244_v24 = vpop.f32.mrb[10].mxu1 }
 0x4e0   : > { %v1248_v26 = vadd.f32 %v1244_v24, %v1171_v3  ;;  %v1745_v27 = vpop.f32.mrb[11].mxu1 }
 0x4e2   : > { %v1256_v28 = vadd.f32 %v1345_v25, %v1248_v26 }
 0x4e4   : > { %1257 = vst [vmem:[%s242_s18] sm:$0xff] %v1256_v28 }
 0x4e5   : > { %1977 = shalt.err (!%p1974_p3)
}
 0x4e6   : > { %s1978_s12 = scalar_lea.hbm %s2568_s20, 128  ;;  %s1982_s15 = scalar_lea.hbm %s2616_s6, 256 }
 0x4e7   : > { %p1979_p4 = scmp.ne.s32.totalorder %s2568_s20, %s1978_s12  ;;  %p1983_p9 = scmp.lt.u32.totalorder %s2568_s20, %s2616_s6 }
 0x4e8   : > { %p1984_p10 = scmp.lt.u32.totalorder %s1982_s15, %s1978_s12  ;;  %p1986_p12 = scmp.lt.u32.totalorder %s1978_s12, %s2568_s20 }
 0x4e9   : > { %p1980_p7 = pnand %p1979_p4, %p2105_p5 }
 0x4ea   : > { %p1985_p11 = por %p1984_p10, %p1983_p9 }
 0x4eb   : > { %p1981_p8 = pneg %p1980_p7 }
 0x4ec   : > { %p1987_p13 = por %p1986_p12, %p1985_p11 }
 0x4ee   : > { %p1988_p0 = pnand %p1987_p13, %p1981_p8 }
 0x4f0   : > { %1991 = shalt.err (!%p1988_p0)
}
 0x4f1   : > { %1914 = dma.vmem_to_hbm [thread:$0]  (%p2105_p5), %s2570_s19, 128, %s2568_s20, %s1259_s29  }
 0x4f2 PF: > { %p1920_p1 = scmp.ge.s32.totalorder %s2026_s24, 2  ;;  %s1284_s18 = sand.u32 1, %s2014_s21  }
 0x4f3   : > { %s1285_s26 = scalar_lea.sflag [#allocation3], %s1284_s18 }
 0x4f4   : > { %p1917_p2 = pnand %p1920_p1, %p2109_p6 }
 0x4f6   : > { %2009 = dma.done.wait (!%p1917_p2), %s1285_s26, 128  }
 0x4f7   : > { %2011 = vsyncadd (!%p1917_p2), %s1285_s26, 4294967168  ;;  %p16_p3 = scmp.ge.s32.totalorder %s2092_s27, 4   ;;  %s2619_s21 = smov %s2018_s22 }
 0x4f8   : > { %s2620_s22 = smov %s2022_s23  ;;  %s2621_s23 = smov %s2103_s30 }
 0x4f9   : > { %s2622_s24 = smov %s2092_s27  ;;  %18 = sbr.rel (!%p16_p3) target bundleno = 3 (0x3), region = 79 }
 0x500   :  { %1290 = vsyncpa [#allocation3], 1 }
 0x501   :  { %1292 = vsyncpa [#allocation3 + $0x1], 1 }

</bundles_post_ra>
